<compile_context>
chip_gen: v6e
topology: v6e:2x2x1
jax: 0.10.0
libtpu: 0.0.40
codegen_flags: <defaults>
</compile_context>

<pallas_src>
import functools
import math

import jax
import jax.numpy as jnp
from jax.experimental import pallas as pl
from jax.experimental.pallas import tpu as pltpu


_LANE = 128      # last dim of every block padded to a multiple of this
_SUBLANE = 8     # batch dim padded to a multiple of this
_BN_EPS = 1e-5
_VMEM_BUDGET = 24 * 1024 * 1024   # conservative: fits v7x's scoped VMEM too


def _round_up(x, m):
    return ((x + m - 1) // m) * m


def _full_spec(shape):
    # Whole-array block, resident in VMEM (grid is empty).
    return pl.BlockSpec(shape, lambda: tuple(0 for _ in shape))


def _pad2d(a, rows, cols):
    return jnp.pad(a, ((0, rows - a.shape[0]), (0, cols - a.shape[1])))


# ------------------------------ Fused kernel ------------------------------- #

def _fused_mlp_kernel(*refs, num_layers, n_real, use_bf16_matmul):
    """refs = (x, [w_i, b_i, gamma_i, beta_i]*(L-1), w_L, b_L, out)."""
    x_ref, o_ref = refs[0], refs[-1]
    prm = refs[1:-1]

    def matmul(a, w_ref):
        if use_bf16_matmul:
            return jnp.dot(a.astype(jnp.bfloat16),
                           w_ref[...].astype(jnp.bfloat16),
                           preferred_element_type=jnp.float32)
        return jnp.dot(a, w_ref[...], preferred_element_type=jnp.float32)

    h = x_ref[...].astype(jnp.float32)
    n_pad = h.shape[0]

    # Row mask built once and reused across layers: padded batch rows must not
    # contaminate the (training-mode) BatchNorm statistics.
    row_ids = jax.lax.broadcasted_iota(jnp.int32, (n_pad, 1), 0)
    row_mask = (row_ids < n_real).astype(jnp.float32)
    inv_n = 1.0 / float(n_real)

    idx = 0
    for _ in range(num_layers - 1):
        w_ref, b_ref, g_ref, be_ref = prm[idx:idx + 4]
        idx += 4
        y = matmul(h, w_ref) + b_ref[...]
        # One-pass BN stats over the *real* rows only: E[y], E[y^2].
        ym = y * row_mask
        mean = jnp.sum(ym, axis=0, keepdims=True) * inv_n
        mean_sq = jnp.sum(ym * y, axis=0, keepdims=True) * inv_n
        var = jnp.maximum(mean_sq - mean * mean, 0.0)
        y_hat = (y - mean) * jax.lax.rsqrt(var + _BN_EPS)
        h = jnp.maximum(g_ref[...] * y_hat + be_ref[...], 0.0)

    w_ref, b_ref = prm[idx], prm[idx + 1]
    o_ref[...] = (matmul(h, w_ref) + b_ref[...]).astype(o_ref.dtype)


def _fused_mlp(x, linears, bns, num_layers, use_bf16_matmul):
    n, d_in = x.shape
    n_pad = _round_up(n, _SUBLANE)
    d_in_pad = _round_up(d_in, _LANE)

    args = [_pad2d(x.astype(jnp.float32), n_pad, d_in_pad)]
    in_specs = [_full_spec((n_pad, d_in_pad))]

    prev_pad = d_in_pad
    max_pad = d_in_pad
    for i in range(num_layers):
        w, b = linears[i]
        d_out_pad = _round_up(w.shape[1], _LANE)
        args += [_pad2d(w, prev_pad, d_out_pad), _pad2d(b, 1, d_out_pad)]
        in_specs += [_full_spec((prev_pad, d_out_pad)), _full_spec((1, d_out_pad))]
        if i < num_layers - 1:
            g, be = bns[i]
            args += [_pad2d(g, 1, d_out_pad), _pad2d(be, 1, d_out_pad)]
            in_specs += [_full_spec((1, d_out_pad)), _full_spec((1, d_out_pad))]
        prev_pad = d_out_pad
        max_pad = max(max_pad, d_out_pad)

    # Rough VMEM-residency check (inputs + output + a few live activations).
    total_bytes = sum(int(a.size) * a.dtype.itemsize for a in args)
    total_bytes += n_pad * prev_pad * 4
    total_bytes += 3 * n_pad * max_pad * 4
    assert total_bytes < _VMEM_BUDGET, (
        "fused MLP does not fit VMEM; see TODO(synk) about tiled fallback")

    kernel = functools.partial(
        _fused_mlp_kernel,
        num_layers=num_layers,
        n_real=n,
        use_bf16_matmul=use_bf16_matmul,
    )
    out_p = pl.pallas_call(
        kernel,
        out_shape=jax.ShapeDtypeStruct((n_pad, prev_pad), jnp.float32),
        in_specs=in_specs,
        out_specs=_full_spec((n_pad, prev_pad)),
        compiler_params=pltpu.CompilerParams(
            vmem_limit_bytes=32 * 1024 * 1024),
    )(*args)
    return out_p


# ------------------------------ Parameter init ----------------------------- #

def _init_linear(key, d_in, d_out):
    """PyTorch nn.Linear default init: U(-1/sqrt(d_in), 1/sqrt(d_in))."""
    k_w, k_b = jax.random.split(key)
    bound = 1.0 / math.sqrt(d_in)
    # Stored pre-transposed: (d_in, d_out) so the kernel computes x @ W.
    w = jax.random.uniform(k_w, (d_in, d_out), jnp.float32, -bound, bound)
    b = jax.random.uniform(k_b, (1, d_out), jnp.float32, -bound, bound)
    return w, b


def init_mlp_params(key, num_layers, input_dim, hidden_dim, output_dim):
    if num_layers < 1:
        raise ValueError("number of layers should be positive!")
    params = {"linears": [], "bn": []}
    if num_layers == 1:
        key, sub = jax.random.split(key)
        params["linears"].append(_init_linear(sub, input_dim, output_dim))
        return params
    dims = [input_dim] + [hidden_dim] * (num_layers - 1) + [output_dim]
    for i in range(num_layers):
        key, sub = jax.random.split(key)
        params["linears"].append(_init_linear(sub, dims[i], dims[i + 1]))
    for _ in range(num_layers - 1):
        # BatchNorm1d default affine init: gamma = 1, beta = 0.
        params["bn"].append(
            (jnp.ones((1, hidden_dim), jnp.float32),
             jnp.zeros((1, hidden_dim), jnp.float32))
        )
    return params


# -------------------------------- Forward ---------------------------------- #

@functools.partial(jax.jit, static_argnames=("num_layers", "use_bf16_matmul"))
def mlp_forward(params, x, num_layers, use_bf16_matmul=False):
    n = x.shape[0]
    d_out = params["linears"][-1][0].shape[1]
    out_p = _fused_mlp(x, params["linears"], params["bn"], num_layers,
                       use_bf16_matmul)
    return out_p[:n, :d_out]


# --------------------------------- Main ------------------------------------ #

if __name__ == "__main__":
    num_layers = 3
    batch = 8
    input_dim = 16
    hidden_dim = 32
    output_dim = 8

    key = jax.random.PRNGKey(0)
    k_params, k_x = jax.random.split(key)

    params = init_mlp_params(k_params, num_layers, input_dim, hidden_dim, output_dim)
    x = jax.random.normal(k_x, (batch, input_dim), jnp.float32)

    out = mlp_forward(params, x, num_layers)
    jax.block_until_ready(out)

    # Pure-JAX reference of the same math (f32, training-mode BN).
    def ref_forward(p, xx, n_layers):
        if n_layers == 1:
            w, b = p["linears"][0]
            return xx @ w + b
        h = xx
        for i in range(n_layers - 1):
            w, b = p["linears"][i]
            g, be = p["bn"][i]
            y = h @ w + b
            m = jnp.mean(y, axis=0, keepdims=True)
            v = jnp.mean((y - m) ** 2, axis=0, keepdims=True)
            h = jnp.maximum(g * (y - m) / jnp.sqrt(v + _BN_EPS) + be, 0.0)
        w, b = p["linears"][-1]
        return h @ w + b

    ref = ref_forward(params, x, num_layers)
    assert out.shape == (batch, output_dim)
    assert jnp.allclose(out, ref, atol=5e-4, rtol=5e-4)

    # Also exercise the single-linear path (num_layers == 1).
    params1 = init_mlp_params(k_params, 1, input_dim, hidden_dim, output_dim)
    out1 = mlp_forward(params1, x, 1)
    jax.block_until_ready(out1)
    ref1 = ref_forward(params1, x, 1)
    assert out1.shape == (batch, output_dim)
    assert jnp.allclose(out1, ref1, atol=5e-4, rtol=5e-4)

    # bf16-MXU-operand variant (perf path for v6e/v7x): smoke-test that it
    # compiles and produces finite outputs of the right shape.
    out_bf16 = mlp_forward(params, x, num_layers, use_bf16_matmul=True)
    jax.block_until_ready(out_bf16)
    assert out_bf16.shape == (batch, output_dim)
    assert bool(jnp.all(jnp.isfinite(out_bf16)))

    print("KERNEL_OK")
</pallas_src>

<mosaic_0001>
module attributes {stable_mosaic.version = 11 : i64} {
  func.func @_fused_mlp_kernel(%arg0: memref<8x128xf32, #tpu.memory_space<vmem>>, %arg1: memref<128x128xf32, #tpu.memory_space<vmem>>, %arg2: memref<1x128xf32, #tpu.memory_space<vmem>>, %arg3: memref<1x128xf32, #tpu.memory_space<vmem>>, %arg4: memref<1x128xf32, #tpu.memory_space<vmem>>, %arg5: memref<128x128xf32, #tpu.memory_space<vmem>>, %arg6: memref<1x128xf32, #tpu.memory_space<vmem>>, %arg7: memref<1x128xf32, #tpu.memory_space<vmem>>, %arg8: memref<1x128xf32, #tpu.memory_space<vmem>>, %arg9: memref<128x128xf32, #tpu.memory_space<vmem>>, %arg10: memref<1x128xf32, #tpu.memory_space<vmem>>, %arg11: memref<8x128xf32, #tpu.memory_space<vmem>>) attributes {dimension_semantics = [], scalar_prefetch = 0 : i64, scratch_operands = 0 : i64, tpu.core_type = #tpu.core_type<tc>} {
    %c0 = arith.constant 0 : index
    %c0_0 = arith.constant 0 : index
    %0 = vector.load %arg0[%c0, %c0_0] : memref<8x128xf32, #tpu.memory_space<vmem>>, vector<8x128xf32>
    %1 = tpu.iota {dimensions = array<i32: 0>} : vector<8x1xi32>
    %c8_i32 = arith.constant 8 : i32
    %2 = vector.broadcast %c8_i32 : i32 to vector<8x1xi32>
    %3 = arith.cmpi slt, %1, %2 : vector<8x1xi32>
    %4 = arith.extui %3 : vector<8x1xi1> to vector<8x1xi32>
    %5 = arith.sitofp %4 : vector<8x1xi32> to vector<8x1xf32>
    %c0_1 = arith.constant 0 : index
    %c0_2 = arith.constant 0 : index
    %6 = vector.load %arg1[%c0_1, %c0_2] : memref<128x128xf32, #tpu.memory_space<vmem>>, vector<128x128xf32>
    %cst = arith.constant dense<0.000000e+00> : vector<8x128xf32>
    %7 = tpu.matmul %0, %6, %cst {dimension_numbers = #tpu.dot_dimension_numbers<[1], [0], [0], [1], [0, 0, 1, 1], [], []>} : vector<8x128xf32>, vector<128x128xf32>, vector<8x128xf32> -> vector<8x128xf32>
    %c0_3 = arith.constant 0 : index
    %c0_4 = arith.constant 0 : index
    %8 = vector.load %arg2[%c0_3, %c0_4] : memref<1x128xf32, #tpu.memory_space<vmem>>, vector<1x128xf32>
    %9 = vector.broadcast %8 : vector<1x128xf32> to vector<8x128xf32>
    %10 = arith.addf %7, %9 : vector<8x128xf32>
    %11 = vector.broadcast %5 : vector<8x1xf32> to vector<8x128xf32>
    %12 = arith.mulf %10, %11 : vector<8x128xf32>
    %cst_5 = arith.constant dense<0.000000e+00> : vector<128xf32>
    %13 = vector.multi_reduction <add>, %12, %cst_5 [0] : vector<8x128xf32> to vector<128xf32>
    %14 = vector.shape_cast %13 : vector<128xf32> to vector<1x128xf32>
    %cst_6 = arith.constant 1.250000e-01 : f32
    %15 = vector.broadcast %cst_6 : f32 to vector<1x128xf32>
    %16 = arith.mulf %14, %15 : vector<1x128xf32>
    %17 = arith.mulf %12, %10 : vector<8x128xf32>
    %cst_7 = arith.constant dense<0.000000e+00> : vector<128xf32>
    %18 = vector.multi_reduction <add>, %17, %cst_7 [0] : vector<8x128xf32> to vector<128xf32>
    %19 = vector.shape_cast %18 : vector<128xf32> to vector<1x128xf32>
    %cst_8 = arith.constant 1.250000e-01 : f32
    %20 = vector.broadcast %cst_8 : f32 to vector<1x128xf32>
    %21 = arith.mulf %19, %20 : vector<1x128xf32>
    %22 = arith.mulf %16, %16 : vector<1x128xf32>
    %23 = arith.subf %21, %22 : vector<1x128xf32>
    %cst_9 = arith.constant 0.000000e+00 : f32
    %24 = vector.broadcast %cst_9 : f32 to vector<1x128xf32>
    %25 = arith.maximumf %23, %24 : vector<1x128xf32>
    %26 = vector.broadcast %16 : vector<1x128xf32> to vector<8x128xf32>
    %27 = arith.subf %10, %26 : vector<8x128xf32>
    %cst_10 = arith.constant 9.99999974E-6 : f32
    %28 = vector.broadcast %cst_10 : f32 to vector<1x128xf32>
    %29 = arith.addf %25, %28 : vector<1x128xf32>
    %30 = math.rsqrt %29 : vector<1x128xf32>
    %31 = vector.broadcast %30 : vector<1x128xf32> to vector<8x128xf32>
    %32 = arith.mulf %27, %31 : vector<8x128xf32>
    %c0_11 = arith.constant 0 : index
    %c0_12 = arith.constant 0 : index
    %33 = vector.load %arg3[%c0_11, %c0_12] : memref<1x128xf32, #tpu.memory_space<vmem>>, vector<1x128xf32>
    %34 = vector.broadcast %33 : vector<1x128xf32> to vector<8x128xf32>
    %35 = arith.mulf %34, %32 : vector<8x128xf32>
    %c0_13 = arith.constant 0 : index
    %c0_14 = arith.constant 0 : index
    %36 = vector.load %arg4[%c0_13, %c0_14] : memref<1x128xf32, #tpu.memory_space<vmem>>, vector<1x128xf32>
    %37 = vector.broadcast %36 : vector<1x128xf32> to vector<8x128xf32>
    %38 = arith.addf %35, %37 : vector<8x128xf32>
    %cst_15 = arith.constant 0.000000e+00 : f32
    %39 = vector.broadcast %cst_15 : f32 to vector<8x128xf32>
    %40 = arith.maximumf %38, %39 : vector<8x128xf32>
    %c0_16 = arith.constant 0 : index
    %c0_17 = arith.constant 0 : index
    %41 = vector.load %arg5[%c0_16, %c0_17] : memref<128x128xf32, #tpu.memory_space<vmem>>, vector<128x128xf32>
    %cst_18 = arith.constant dense<0.000000e+00> : vector<8x128xf32>
    %42 = tpu.matmul %40, %41, %cst_18 {dimension_numbers = #tpu.dot_dimension_numbers<[1], [0], [0], [1], [0, 0, 1, 1], [], []>} : vector<8x128xf32>, vector<128x128xf32>, vector<8x128xf32> -> vector<8x128xf32>
    %c0_19 = arith.constant 0 : index
    %c0_20 = arith.constant 0 : index
    %43 = vector.load %arg6[%c0_19, %c0_20] : memref<1x128xf32, #tpu.memory_space<vmem>>, vector<1x128xf32>
    %44 = vector.broadcast %43 : vector<1x128xf32> to vector<8x128xf32>
    %45 = arith.addf %42, %44 : vector<8x128xf32>
    %46 = vector.broadcast %5 : vector<8x1xf32> to vector<8x128xf32>
    %47 = arith.mulf %45, %46 : vector<8x128xf32>
    %cst_21 = arith.constant dense<0.000000e+00> : vector<128xf32>
    %48 = vector.multi_reduction <add>, %47, %cst_21 [0] : vector<8x128xf32> to vector<128xf32>
    %49 = vector.shape_cast %48 : vector<128xf32> to vector<1x128xf32>
    %cst_22 = arith.constant 1.250000e-01 : f32
    %50 = vector.broadcast %cst_22 : f32 to vector<1x128xf32>
    %51 = arith.mulf %49, %50 : vector<1x128xf32>
    %52 = arith.mulf %47, %45 : vector<8x128xf32>
    %cst_23 = arith.constant dense<0.000000e+00> : vector<128xf32>
    %53 = vector.multi_reduction <add>, %52, %cst_23 [0] : vector<8x128xf32> to vector<128xf32>
    %54 = vector.shape_cast %53 : vector<128xf32> to vector<1x128xf32>
    %cst_24 = arith.constant 1.250000e-01 : f32
    %55 = vector.broadcast %cst_24 : f32 to vector<1x128xf32>
    %56 = arith.mulf %54, %55 : vector<1x128xf32>
    %57 = arith.mulf %51, %51 : vector<1x128xf32>
    %58 = arith.subf %56, %57 : vector<1x128xf32>
    %cst_25 = arith.constant 0.000000e+00 : f32
    %59 = vector.broadcast %cst_25 : f32 to vector<1x128xf32>
    %60 = arith.maximumf %58, %59 : vector<1x128xf32>
    %61 = vector.broadcast %51 : vector<1x128xf32> to vector<8x128xf32>
    %62 = arith.subf %45, %61 : vector<8x128xf32>
    %cst_26 = arith.constant 9.99999974E-6 : f32
    %63 = vector.broadcast %cst_26 : f32 to vector<1x128xf32>
    %64 = arith.addf %60, %63 : vector<1x128xf32>
    %65 = math.rsqrt %64 : vector<1x128xf32>
    %66 = vector.broadcast %65 : vector<1x128xf32> to vector<8x128xf32>
    %67 = arith.mulf %62, %66 : vector<8x128xf32>
    %c0_27 = arith.constant 0 : index
    %c0_28 = arith.constant 0 : index
    %68 = vector.load %arg7[%c0_27, %c0_28] : memref<1x128xf32, #tpu.memory_space<vmem>>, vector<1x128xf32>
    %69 = vector.broadcast %68 : vector<1x128xf32> to vector<8x128xf32>
    %70 = arith.mulf %69, %67 : vector<8x128xf32>
    %c0_29 = arith.constant 0 : index
    %c0_30 = arith.constant 0 : index
    %71 = vector.load %arg8[%c0_29, %c0_30] : memref<1x128xf32, #tpu.memory_space<vmem>>, vector<1x128xf32>
    %72 = vector.broadcast %71 : vector<1x128xf32> to vector<8x128xf32>
    %73 = arith.addf %70, %72 : vector<8x128xf32>
    %cst_31 = arith.constant 0.000000e+00 : f32
    %74 = vector.broadcast %cst_31 : f32 to vector<8x128xf32>
    %75 = arith.maximumf %73, %74 : vector<8x128xf32>
    %c0_32 = arith.constant 0 : index
    %c0_33 = arith.constant 0 : index
    %76 = vector.load %arg9[%c0_32, %c0_33] : memref<128x128xf32, #tpu.memory_space<vmem>>, vector<128x128xf32>
    %cst_34 = arith.constant dense<0.000000e+00> : vector<8x128xf32>
    %77 = tpu.matmul %75, %76, %cst_34 {dimension_numbers = #tpu.dot_dimension_numbers<[1], [0], [0], [1], [0, 0, 1, 1], [], []>} : vector<8x128xf32>, vector<128x128xf32>, vector<8x128xf32> -> vector<8x128xf32>
    %c0_35 = arith.constant 0 : index
    %c0_36 = arith.constant 0 : index
    %78 = vector.load %arg10[%c0_35, %c0_36] : memref<1x128xf32, #tpu.memory_space<vmem>>, vector<1x128xf32>
    %79 = vector.broadcast %78 : vector<1x128xf32> to vector<8x128xf32>
    %80 = arith.addf %77, %79 : vector<8x128xf32>
    %c0_37 = arith.constant 0 : index
    %c0_38 = arith.constant 0 : index
    %81 = vector.load %arg11[%c0_37, %c0_38] : memref<8x128xf32, #tpu.memory_space<vmem>>, vector<8x128xf32>
    tpu.vector_store %arg11[%c0_37, %c0_38], %80 {strides = array<i32>} : memref<8x128xf32, #tpu.memory_space<vmem>>, vector<8x128xf32>,
    return
  }
}

</mosaic_0001>

<bundles_post_ra>
// kernel: mlp_forward.1
= control target key start
LH: loop header
LB: loop body
LE: loop exit
PB: predicated region body
PF: predicated region fallthrough
CT: control target
= control target key end

     0   :  { %v611_v1 = vmov 0.0   ;;  %vm612_vm0 = vmmov 0   ;;  %s899_s0 = inlined_call_operand.vmem [shape: f32[8,128], index: 0, kind: input, shape index: {}]   ;;  %s900_s1 = inlined_call_operand.vmem [shape: f32[128,128], index: 1, kind: input, shape index: {}]   ;;  %s901_s2 = inlined_call_operand.vmem [shape: f32[1,128], index: 2, kind: input, shape index: {}]   ;;  %s902_s3 = inlined_call_operand.vmem [shape: f32[1,128], index: 3, kind: input, shape index: {}]   ;;  %s903_s4 = inlined_call_operand.vmem [shape: f32[1,128], index: 4, kind: input, shape index: {}]   ;;  %s904_s5 = inlined_call_operand.vmem [shape: f32[128,128], index: 5, kind: input, shape index: {}]   ;;  %s905_s6 = inlined_call_operand.vmem [shape: f32[1,128], index: 6, kind: input, shape index: {}]   ;;  %s906_s7 = inlined_call_operand.vmem [shape: f32[1,128], index: 7, kind: input, shape index: {}]   ;;  %s907_s8 = inlined_call_operand.vmem [shape: f32[1,128], index: 8, kind: input, shape index: {}]   ;;  %s908_s9 = inlined_call_operand.vmem [shape: f32[128,128], index: 9, kind: input, shape index: {}]   ;;  %s909_s10 = inlined_call_operand.vmem [shape: f32[1,128], index: 10, kind: input, shape index: {}]   ;;  %s910_s11 = inlined_call_operand.hbm [shape: f32[8,128], index: 11, kind: output, shape index: {}]  }
   0x1   :  { %v60_v0 = vld [vmem:[%s900_s1 + $0x78] sm:$0xff]  ;;  %477 = vmatprep.subr.mxu0 %v611_v1  ;;  %v59_v2 = vld [vmem:[%s900_s1 + $0x70] sm:$0xff]  ;;  %509 = vmatprep.mubr.msk.f32.mxu0 %vm612_vm0, %v611_v1  ;;  %v58_v3 = vld [vmem:[%s900_s1 + $0x68] sm:$0xff] }
   0x2   :  { %478 = vmatpush3.msra.mxu0 %v60_v0  ;;  %512 = vmatprep.subr.mxu1 %v611_v1  ;;  %v57_v4 = vld [vmem:[%s900_s1 + $0x60] sm:$0xff] }
   0x3   :  { %479 = vmatprep.subr.mxu0 %v611_v1  ;;  %544 = vmatprep.mubr.msk.f32.mxu1 %vm612_vm0, %v611_v1 }
   0x4   :  { %480 = vmatpush3.msra.mxu0 %v59_v2 }
   0x5   :  { %481 = vmatprep.subr.mxu0 %v611_v1 }
   0x6   :  { %482 = vmatpush3.msra.mxu0 %v58_v3 }
   0x7   :  { %16 = vsyncpa [#allocation3], 0  ;;  %483 = vmatprep.subr.mxu0 %v611_v1  ;;  %v56_v5 = vld [vmem:[%s900_s1 + $0x58] sm:$0xff]  ;;  %v55_v6 = vld [vmem:[%s900_s1 + $0x50] sm:$0xff]  ;;  %s613_s16 = smov [#allocation2]  }
   0x8   :  { %484 = vmatpush3.msra.mxu0 %v57_v4  ;;  %v54_v7 = vld [vmem:[%s900_s1 + $0x48] sm:$0xff]  ;;  %v53_v8 = vld [vmem:[%s900_s1 + $0x40] sm:$0xff]  ;;  %v52_v9 = vld [vmem:[%s900_s1 + $0x38] sm:$0xff]  ;;  %s411_s17 = sshll.u32 %s613_s16, 4  ;;  %s412_s17 = int_to_ptr.vmem [resolvable:$true] %s411_s17 }
   0x9   :  { %485 = vmatprep.subr.mxu0 %v611_v1  ;;  %v51_v10 = vld [vmem:[%s900_s1 + $0x30] sm:$0xff]  ;;  %v50_v11 = vld [vmem:[%s900_s1 + $0x28] sm:$0xff]  ;;  %v49_v12 = vld [vmem:[%s900_s1 + $0x20] sm:$0xff]  ;;  %p594_p1 = scmp.lt.s32.totalorder %s412_s17, %s412_s17 }
   0xa   :  { %486 = vmatpush3.msra.mxu0 %v56_v5  ;;  %v48_v13 = vld [vmem:[%s900_s1 + $0x18] sm:$0xff]  ;;  %v47_v14 = vld [vmem:[%s900_s1 + $0x10] sm:$0xff]  ;;  %v46_v15 = vld [vmem:[%s900_s1 + $0x8] sm:$0xff] }
   0xb   :  { %487 = vmatprep.subr.mxu0 %v611_v1  ;;  %v45_v16 = vld [vmem:[%s900_s1] sm:$0xff]  ;;  %v193_v18 = vld [vmem:[%s904_s5 + $0x78] sm:$0xff]  ;;  %v192_v19 = vld [vmem:[%s904_s5 + $0x70] sm:$0xff] }
   0xc   :  { %488 = vmatpush3.msra.mxu0 %v55_v6  ;;  %v39_v17 = vld [vmem:[%s899_s0] sm:$0xff]  ;;  %513 = vmatpush3.msra.mxu1 %v193_v18  ;;  %v191_v20 = vld [vmem:[%s904_s5 + $0x68] sm:$0xff]  ;;  %v189_v22 = vld [vmem:[%s904_s5 + $0x58] sm:$0xff] }
   0xd   :  { %489 = vmatprep.subr.mxu0 %v611_v1  ;;  %514 = vmatprep.subr.mxu1 %v611_v1  ;;  %v190_v21 = vld [vmem:[%s904_s5 + $0x60] sm:$0xff]  ;;  %v188_v23 = vld [vmem:[%s904_s5 + $0x50] sm:$0xff]  ;;  %v187_v24 = vld [vmem:[%s904_s5 + $0x48] sm:$0xff] }
   0xe   :  { %490 = vmatpush3.msra.mxu0 %v54_v7  ;;  %515 = vmatpush3.msra.mxu1 %v192_v19  ;;  %v186_v25 = vld [vmem:[%s904_s5 + $0x40] sm:$0xff]  ;;  %v185_v26 = vld [vmem:[%s904_s5 + $0x38] sm:$0xff]  ;;  %v184_v27 = vld [vmem:[%s904_s5 + $0x30] sm:$0xff] }
   0xf   :  { %491 = vmatprep.subr.mxu0 %v611_v1  ;;  %516 = vmatprep.subr.mxu1 %v611_v1  ;;  %v183_v28 = vld [vmem:[%s904_s5 + $0x28] sm:$0xff]  ;;  %v182_v29 = vld [vmem:[%s904_s5 + $0x20] sm:$0xff]  ;;  %v181_v30 = vld [vmem:[%s904_s5 + $0x18] sm:$0xff] }
  0x10   :  { %492 = vmatpush3.msra.mxu0 %v53_v8  ;;  %517 = vmatpush3.msra.mxu1 %v191_v20  ;;  %v180_v31 = vld [vmem:[%s904_s5 + $0x10] sm:$0xff]  ;;  %v179_v32 = vld [vmem:[%s904_s5 + $0x8] sm:$0xff]  ;;  %v178_v33 = vld [vmem:[%s904_s5] sm:$0xff] }
  0x11   :  { %493 = vmatprep.subr.mxu0 %v611_v1  ;;  %518 = vmatprep.subr.mxu1 %v611_v1  ;;  %v419_v34 = vld [vmem:[%s901_s2] ss:$0 sm:$0xff]  ;;  %v326_v2 = vld [vmem:[%s908_s9 + $0x78] sm:$0xff]  ;;  %v325_v3 = vld [vmem:[%s908_s9 + $0x70] sm:$0xff] }
  0x12   :  { %494 = vmatpush3.msra.mxu0 %v52_v9  ;;  %519 = vmatpush3.msra.mxu1 %v190_v21  ;;  %v420_v59 = vld [vmem:[%s902_s3] ss:$0 sm:$0xff]  ;;  %v324_v4 = vld [vmem:[%s908_s9 + $0x68] sm:$0xff]  ;;  %v322_v6 = vld [vmem:[%s908_s9 + $0x58] sm:$0xff] }
  0x13   :  { %495 = vmatprep.subr.mxu0 %v611_v1  ;;  %520 = vmatprep.subr.mxu1 %v611_v1  ;;  %v421_v61 = vld [vmem:[%s903_s4] ss:$0 sm:$0xff]  ;;  %v321_v7 = vld [vmem:[%s908_s9 + $0x50] sm:$0xff]  ;;  %v320_v8 = vld [vmem:[%s908_s9 + $0x48] sm:$0xff] }
  0x14   :  { %496 = vmatpush3.msra.mxu0 %v51_v10  ;;  %521 = vmatpush3.msra.mxu1 %v189_v22  ;;  %v323_v5 = vld [vmem:[%s908_s9 + $0x60] sm:$0xff]  ;;  %v318_v10 = vld [vmem:[%s908_s9 + $0x38] sm:$0xff] }
  0x15   :  { %497 = vmatprep.subr.mxu0 %v611_v1  ;;  %522 = vmatprep.subr.mxu1 %v611_v1  ;;  %v319_v9 = vld [vmem:[%s908_s9 + $0x40] sm:$0xff] }
  0x16   :  { %498 = vmatpush3.msra.mxu0 %v50_v11  ;;  %523 = vmatpush3.msra.mxu1 %v188_v23  ;;  %v317_v11 = vld [vmem:[%s908_s9 + $0x30] sm:$0xff]  ;;  %v422_v18 = vld [vmem:[%s905_s6] ss:$0 sm:$0xff] }
  0x17   :  { %499 = vmatprep.subr.mxu0 %v611_v1  ;;  %524 = vmatprep.subr.mxu1 %v611_v1 }
  0x18   :  { %500 = vmatpush3.msra.mxu0 %v49_v12  ;;  %525 = vmatpush3.msra.mxu1 %v187_v24  ;;  %v316_v12 = vld [vmem:[%s908_s9 + $0x28] sm:$0xff] }
  0x19   :  { %501 = vmatprep.subr.mxu0 %v611_v1  ;;  %526 = vmatprep.subr.mxu1 %v611_v1 }
  0x1a   :  { %502 = vmatpush3.msra.mxu0 %v48_v13  ;;  %527 = vmatpush3.msra.mxu1 %v186_v25  ;;  %v315_v13 = vld [vmem:[%s908_s9 + $0x20] sm:$0xff] }
  0x1b   :  { %503 = vmatprep.subr.mxu0 %v611_v1  ;;  %528 = vmatprep.subr.mxu1 %v611_v1 }
  0x1c   :  { %504 = vmatpush3.msra.mxu0 %v47_v14  ;;  %529 = vmatpush3.msra.mxu1 %v185_v26  ;;  %v314_v14 = vld [vmem:[%s908_s9 + $0x18] sm:$0xff] }
  0x1d   :  { %505 = vmatprep.subr.mxu0 %v611_v1  ;;  %530 = vmatprep.subr.mxu1 %v611_v1 }
  0x1e   :  { %506 = vmatpush3.msra.mxu0 %v46_v15  ;;  %531 = vmatpush3.msra.mxu1 %v184_v27  ;;  %v313_v15 = vld [vmem:[%s908_s9 + $0x10] sm:$0xff] }
  0x1f   :  { %507 = vmatprep.subr.mxu0 %v611_v1  ;;  %532 = vmatprep.subr.mxu1 %v611_v1 }
  0x20   :  { %508 = vmatpush3.msra.mxu0 %v45_v16  ;;  %533 = vmatpush3.msra.mxu1 %v183_v28  ;;  %v312_v16 = vld [vmem:[%s908_s9 + $0x8] sm:$0xff] }
  0x21   :  { %510 = vmatmul.mubr.f32.vlgmr.msra.gmra.mxu0 %v39_v17  ;;  %547 = vmatprep.subr.mxu0 %v611_v1  ;;  %v311_v17 = vld [vmem:[%s908_s9] sm:$0xff] }
  0x22   :  { %579 = vmatprep.mubr.msk.f32.mxu0 %vm612_vm0, %v611_v1  ;;  %534 = vmatprep.subr.mxu1 %v611_v1 }
  0x23   :  { %535 = vmatpush3.msra.mxu1 %v182_v29  ;;  %548 = vmatpush3.msra.mxu0 %v326_v2 }
  0x24   :  { %536 = vmatprep.subr.mxu1 %v611_v1  ;;  %549 = vmatprep.subr.mxu0 %v611_v1 }
  0x25   :  { %537 = vmatpush3.msra.mxu1 %v181_v30  ;;  %550 = vmatpush3.msra.mxu0 %v325_v3 }
  0x26   :  { %538 = vmatprep.subr.mxu1 %v611_v1  ;;  %551 = vmatprep.subr.mxu0 %v611_v1 }
  0x27   :  { %539 = vmatpush3.msra.mxu1 %v180_v31  ;;  %552 = vmatpush3.msra.mxu0 %v324_v4 }
  0x28   :  { %540 = vmatprep.subr.mxu1 %v611_v1  ;;  %553 = vmatprep.subr.mxu0 %v611_v1 }
  0x29   :  { %541 = vmatpush3.msra.mxu1 %v179_v32  ;;  %554 = vmatpush3.msra.mxu0 %v323_v5 }
  0x2a   :  { %542 = vmatprep.subr.mxu1 %v611_v1  ;;  %555 = vmatprep.subr.mxu0 %v611_v1 }
  0x2b   :  { %543 = vmatpush3.msra.mxu1 %v178_v33  ;;  %556 = vmatpush3.msra.mxu0 %v322_v6 }
  0x2c   :  { %557 = vmatprep.subr.mxu0 %v611_v1 }
  0x2d   :  { %558 = vmatpush3.msra.mxu0 %v321_v7 }
  0x2e   :  { %559 = vmatprep.subr.mxu0 %v611_v1 }
  0x2f   :  { %560 = vmatpush3.msra.mxu0 %v320_v8 }
  0x30   :  { %561 = vmatprep.subr.mxu0 %v611_v1 }
  0x31   :  { %562 = vmatpush3.msra.mxu0 %v319_v9 }
  0x32   :  { %563 = vmatprep.subr.mxu0 %v611_v1 }
  0x33   :  { %564 = vmatpush3.msra.mxu0 %v318_v10 }
  0x34   :  { %565 = vmatprep.subr.mxu0 %v611_v1 }
  0x35   :  { %566 = vmatpush3.msra.mxu0 %v317_v11 }
  0x36   :  { %567 = vmatprep.subr.mxu0 %v611_v1 }
  0x37   :  { %568 = vmatpush3.msra.mxu0 %v316_v12 }
  0x38   :  { %569 = vmatprep.subr.mxu0 %v611_v1 }
  0x39   :  { %570 = vmatpush3.msra.mxu0 %v315_v13 }
  0x3a   :  { %571 = vmatprep.subr.mxu0 %v611_v1 }
  0x3b   :  { %572 = vmatpush3.msra.mxu0 %v314_v14 }
  0x3c   :  { %573 = vmatprep.subr.mxu0 %v611_v1 }
  0x3d   :  { %574 = vmatpush3.msra.mxu0 %v313_v15 }
  0x3e   :  { %575 = vmatprep.subr.mxu0 %v611_v1 }
  0x3f   :  { %576 = vmatpush3.msra.mxu0 %v312_v16 }
  0x40   :  { %577 = vmatprep.subr.mxu0 %v611_v1 }
  0x41   :  { %578 = vmatpush3.msra.mxu0 %v311_v17 }
  0xe1   :  { %v134_v35 = vpop.f32.mrf.mxu0 }
  0xe2   :  { %v135_v36 = vadd.f32 %v419_v34, %v134_v35 }
  0xe3   :  { %v511_v37 = vpop.f32.mrf.mxu0 }
  0xe4   :  { %v139_v38 = vrot.slane %v135_v36, 4  ;;  %v146_v39 = vmul.f32 %v135_v36, %v135_v36 }
  0xe6   :  { %v140_v40 = vadd.f32 %v139_v38, %v135_v36  ;;  %v147_v41 = vrot.slane %v146_v39, 4 }
  0xe8   :  { %v141_v42 = vrot.slane %v140_v40, 2  ;;  %v148_v43 = vadd.f32 %v147_v41, %v146_v39 }
  0xea   :  { %v142_v44 = vadd.f32 %v141_v42, %v140_v40  ;;  %v149_v45 = vrot.slane %v148_v43, 2  ;;  %v423_v42 = vld [vmem:[%s906_s7] ss:$0 sm:$0xff]  ;;  %s589_s7 = scalar_lea.vmem %s412_s17, 128 }
  0xeb   :  { %p590_p0 = scmp.ne.s32.totalorder %s412_s17, %s589_s7  ;;  %p595_p2 = scmp.lt.s32.totalorder %s589_s7, %s589_s7 }
  0xec   :  { %v143_v46 = vrot.slane %v142_v44, 1  ;;  %v150_v47 = vadd.f32 %v149_v45, %v148_v43 }
  0xed   :  { %p596_p3 = por %p595_p2, %p594_p1 }
  0xee   :  { %v144_v48 = vadd.f32 %v143_v46, %v142_v44  ;;  %v151_v49 = vrot.slane %v150_v47, 1  ;;  %v424_v44 = vld [vmem:[%s907_s8] ss:$0 sm:$0xff] }
  0xef   :  { %p597_p4 = pnand %p596_p3, %p590_p0 }
  0xf0   :  { %v145_v50 = vmul.f32 0.125, %v144_v48  ;;  %v152_v51 = vadd.f32 %v151_v49, %v150_v47  ;;  %v425_v48 = vld [vmem:[%s909_s10] ss:$0 sm:$0xff] }
  0xf2   :  { %v153_v52 = vmul.f32 0.125, %v152_v51  ;;  %v154_v53 = vmul.f32 %v145_v50, %v145_v50  ;;  %v157_v57 = vsub.f32 %v135_v36, %v145_v50 }
  0xf4   :  { %v155_v54 = vsub.f32 %v153_v52, %v154_v53 }
  0xf6   :  { %v156_v55 = vmax.f32 %v155_v54, 0.0 }
  0xf8   :  { %v158_v56 = vadd.f32 1e-05, %v156_v55 }
  0xfa   :  { %585 = vrsqrt.f32 %v158_v56 }
 0x107   :  { %v586_v58 = vpop.eup %585 }
 0x108   :  { %v160_v60 = vmul.f32 %v586_v58, %v157_v57 }
 0x10a   :  { %v168_v62 = vmul.f32 %v420_v59, %v160_v60 }
 0x10c   :  { %v176_v63 = vadd.f32 %v421_v61, %v168_v62 }
 0x10e   :  { %v177_v0 = vmax.f32 %v176_v63, 0.0 }
 0x110   :  { %545 = vmatmul.mubr.f32.vlgmr.msra.gmra.mxu1 %v177_v0 }
 0x1d0   :  { %v267_v19 = vpop.f32.mrf.mxu1 }
 0x1d1   :  { %v268_v20 = vadd.f32 %v422_v18, %v267_v19 }
 0x1d2   :  { %v546_v21 = vpop.f32.mrf.mxu1 }
 0x1d3   :  { %v272_v22 = vrot.slane %v268_v20, 4  ;;  %v279_v23 = vmul.f32 %v268_v20, %v268_v20 }
 0x1d5   :  { %v273_v24 = vadd.f32 %v272_v22, %v268_v20  ;;  %v280_v25 = vrot.slane %v279_v23, 4 }
 0x1d7   :  { %v274_v26 = vrot.slane %v273_v24, 2  ;;  %v281_v27 = vadd.f32 %v280_v25, %v279_v23 }
 0x1d9   :  { %v275_v28 = vadd.f32 %v274_v26, %v273_v24  ;;  %v282_v29 = vrot.slane %v281_v27, 2 }
 0x1db   :  { %v276_v30 = vrot.slane %v275_v28, 1  ;;  %v283_v31 = vadd.f32 %v282_v29, %v281_v27 }
 0x1dd   :  { %v277_v32 = vadd.f32 %v276_v30, %v275_v28  ;;  %v284_v1 = vrot.slane %v283_v31, 1 }
 0x1df   :  { %v278_v33 = vmul.f32 0.125, %v277_v32  ;;  %v285_v34 = vadd.f32 %v284_v1, %v283_v31 }
 0x1e1   :  { %v286_v35 = vmul.f32 0.125, %v285_v34  ;;  %v287_v36 = vmul.f32 %v278_v33, %v278_v33  ;;  %v290_v40 = vsub.f32 %v268_v20, %v278_v33 }
 0x1e3   :  { %v288_v37 = vsub.f32 %v286_v35, %v287_v36 }
 0x1e5   :  { %v289_v38 = vmax.f32 %v288_v37, 0.0 }
 0x1e7   :  { %v291_v39 = vadd.f32 1e-05, %v289_v38 }
 0x1e9   :  { %587 = vrsqrt.f32 %v291_v39 }
 0x1f6   :  { %v588_v41 = vpop.eup %587 }
 0x1f7   :  { %v293_v43 = vmul.f32 %v588_v41, %v290_v40 }
 0x1f9   :  { %v301_v45 = vmul.f32 %v423_v42, %v293_v43 }
 0x1fb   :  { %v309_v46 = vadd.f32 %v424_v44, %v301_v45 }
 0x1fd   :  { %v310_v47 = vmax.f32 %v309_v46, 0.0 }
 0x1ff   :  { %580 = vmatmul.mubr.f32.vlgmr.msra.gmra.mxu0 %v310_v47 }
 0x2bf   :  { %v400_v49 = vpop.f32.mrf.mxu0 }
 0x2c0   :  { %v401_v50 = vadd.f32 %v425_v48, %v400_v49 }
 0x2c1   :  { %v581_v51 = vpop.f32.mrf.mxu0 }
 0x2c2   :  { %404 = vst [vmem:[#allocation2] sm:$0xff] %v401_v50 }
 0x2c3   :  { %600 = shalt.err (!%p597_p4)
}
 0x2c4   :  { %414 = dma.vmem_to_hbm [thread:$0]  %s412_s17, 128, %s910_s11, [#allocation3]  }
 0x2c5   :  { %609 = dma.done.wait [#allocation3], 128  }
 0x2c6   :  { %610 = vsyncadd [#allocation3], 4294967168 }
 0x2c7   :  { %418 = vsyncpa [#allocation3], 1 }

</bundles_post_ra>
